<compile_context>
chip_gen: v5e
topology: v5e:2x2
jax: 0.10.0
libtpu: 0.0.40
codegen_flags: <defaults>
</compile_context>

<pallas_src>
import functools

import jax
import jax.numpy as jnp
from jax.experimental import pallas as pl
from jax.experimental.pallas import tpu as pltpu


class Lambda:
    """JAX equivalent of the PyTorch Lambda module: forwards to `func`."""

    def __init__(self, func):
        self.func = func

    def __call__(self, *args, **kwargs):
        return self.func(*args, **kwargs)


# F.normalize default eps is 1e-12 on the norm; clamp the squared sum at eps**2.
_EPS_SQ = 1e-24


def _l2norm_kernel(x_ref, o_ref):
    """Plain path: one logical row per block row, reduce over the full lane dim."""
    x = x_ref[...]
    xf = x if x.dtype == jnp.float32 else x.astype(jnp.float32)
    sq_sum = jnp.sum(xf * xf, axis=-1, keepdims=True)
    inv = jax.lax.rsqrt(jnp.maximum(sq_sum, _EPS_SQ))   # == 1 / max(||x||, 1e-12)
    o_ref[...] = (xf * inv).astype(o_ref.dtype)


def _l2norm_packed_kernel(x_ref, o_ref, *, hidden):
    """Lane-dense path: each block row packs G = lane_w // hidden logical rows."""
    x = x_ref[...]
    xf = x if x.dtype == jnp.float32 else x.astype(jnp.float32)
    rt, lane_w = x_ref.shape
    num_seg = lane_w // hidden
    sq = xf * xf
    lane = jax.lax.broadcasted_iota(jnp.int32, (rt, lane_w), 1)
    inv = jnp.zeros((rt, lane_w), jnp.float32)
    for g in range(num_seg):                            # static unroll, num_seg <= 16
        s = jnp.sum(sq[:, g * hidden:(g + 1) * hidden], axis=-1, keepdims=True)
        inv_g = jax.lax.rsqrt(jnp.maximum(s, _EPS_SQ))  # (rt, 1)
        in_seg = (lane >= g * hidden) & (lane < (g + 1) * hidden)
        inv = jnp.where(in_seg, inv_g, inv)
    o_ref[...] = (xf * inv).astype(o_ref.dtype)


def l2_normalize_lastdim(x, *, row_tile=None, vmem_budget_bytes=8 * 1024 * 1024):
    """F.normalize(x, p=2, dim=-1) implemented as a Pallas TPU kernel."""
    orig_shape = x.shape
    hidden = orig_shape[-1]
    rows = 1
    for d in orig_shape[:-1]:
        rows *= d
    dtype_bytes = jnp.dtype(x.dtype).itemsize

    # Lane-dense packing: fold G consecutive rows into one 128-lane row when the
    # feature dim is narrow (free contiguous reshape, full-lane vector stores).
    grp = 128 // hidden if (hidden < 128 and 128 % hidden == 0) else 1
    pack = (grp > 1) and (grp <= 16) and (rows % grp == 0)
    if pack:
        lane_w = grp * hidden            # == 128
        rows_p = rows // grp
        kernel = functools.partial(_l2norm_packed_kernel, hidden=hidden)
    else:
        lane_w = hidden
        rows_p = rows
        kernel = _l2norm_kernel

    x2d = x.reshape(rows_p, lane_w)

    if row_tile is None:
        # Double-buffered input + output => ~4 live blocks; keep them in budget
        # (safe under v5e's 16 MiB default scoped VMEM and v7x's 64 MiB physical).
        cap = max(8, vmem_budget_bytes // (4 * lane_w * dtype_bytes))
        row_tile = min(1024, cap)
        if rows_p > 16:
            # Keep at least 2 grid steps so both v7x TensorCores get work.
            half = -(-rows_p // 2)
            row_tile = min(row_tile, ((half + 7) // 8) * 8)
        row_tile = max(8, row_tile - row_tile % 8)
    if rows_p <= row_tile:
        row_tile = rows_p                # single full-extent block (always legal)

    grid = (pl.cdiv(rows_p, row_tile),)  # ragged last tile handled by Pallas masking
    out2d = pl.pallas_call(
        kernel,
        out_shape=jax.ShapeDtypeStruct((rows_p, lane_w), x.dtype),
        grid_spec=pltpu.PrefetchScalarGridSpec(
            num_scalar_prefetch=0,
            grid=grid,
            in_specs=[pl.BlockSpec((row_tile, lane_w), lambda i: (i, 0))],
            out_specs=pl.BlockSpec((row_tile, lane_w), lambda i: (i, 0)),
        ),
        compiler_params=pltpu.CompilerParams(
            dimension_semantics=("parallel",),
            vmem_limit_bytes=32 * 1024 * 1024,
        ),
    )(x2d)

    return out2d.reshape(orig_shape)


def _ref_normalize(x):
    xf = x.astype(jnp.float32)
    norm = jnp.sqrt(jnp.sum(xf * xf, axis=-1, keepdims=True))
    return xf / jnp.maximum(norm, 1e-12)


if __name__ == "__main__":
    key = jax.random.PRNGKey(0)
    k1, k2, k3 = jax.random.split(key, 3)

    # 1) Canonical small shape (batch=2, seq=8, hidden=32): lane-dense packed path.
    x1 = jax.random.normal(k1, (2, 8, 32), dtype=jnp.float32)
    lam = Lambda(l2_normalize_lastdim)          # Lambda wrapping the Pallas-backed fn
    out1 = jax.block_until_ready(lam(x1))
    assert out1.shape == x1.shape
    assert jnp.allclose(out1, _ref_normalize(x1), atol=1e-5, rtol=1e-5)

    # 2) Wide-hidden plain path with a ragged row grid (rows=15, row_tile=8 -> 2 steps,
    #    last tile masked by Pallas; no host-side pad/slice).
    x2 = jax.random.normal(k2, (3, 5, 256), dtype=jnp.float32)
    out2 = jax.block_until_ready(l2_normalize_lastdim(x2, row_tile=8))
    assert out2.shape == x2.shape
    assert jnp.allclose(out2, _ref_normalize(x2), atol=1e-5, rtol=1e-5)

    # 3) bf16 input through the packed path (f32 accumulation inside the kernel).
    x3 = jax.random.normal(k3, (2, 64, 32), dtype=jnp.float32).astype(jnp.bfloat16)
    out3 = jax.block_until_ready(l2_normalize_lastdim(x3))
    assert out3.dtype == jnp.bfloat16 and out3.shape == x3.shape
    assert jnp.allclose(out3.astype(jnp.float32), _ref_normalize(x3),
                        atol=2e-2, rtol=2e-2)

    print("KERNEL_OK")
</pallas_src>

<mosaic_0001>
module attributes {stable_mosaic.version = 11 : i64} {
  func.func @_l2norm_packed_kernel(%arg0: i32, %arg1: memref<4x128xf32, #tpu.memory_space<vmem>>, %arg2: memref<4x128xf32, #tpu.memory_space<vmem>>) attributes {dimension_semantics = [#tpu.dimension_semantics<parallel>], iteration_bounds = array<i64: 1>, scalar_prefetch = 0 : i64, scratch_operands = 0 : i64, tpu.core_type = #tpu.core_type<tc>, window_params = [{transform_indices = @transform_0, window_bounds = array<i64: 4, 128>}, {transform_indices = @transform_1, window_bounds = array<i64: 4, 128>}]} {
    %c0 = arith.constant 0 : index
    %c0_0 = arith.constant 0 : index
    %0 = vector.load %arg1[%c0, %c0_0] : memref<4x128xf32, #tpu.memory_space<vmem>>, vector<4x128xf32>
    %1 = arith.mulf %0, %0 : vector<4x128xf32>
    %2 = tpu.iota {dimensions = array<i32: 1>} : vector<4x128xi32>
    %cst = arith.constant 0.000000e+00 : f32
    %3 = vector.broadcast %cst : f32 to vector<4x128xf32>
    %4 = vector.extract_strided_slice %1 {offsets = [0, 0], sizes = [4, 32], strides = [1, 1]} : vector<4x128xf32> to vector<4x32xf32>
    %cst_1 = arith.constant dense<0.000000e+00> : vector<4xf32>
    %5 = vector.multi_reduction <add>, %4, %cst_1 [1] : vector<4x32xf32> to vector<4xf32>
    %6 = vector.shape_cast %5 : vector<4xf32> to vector<4x1xf32>
    %cst_2 = arith.constant 1.000000e-24 : f32
    %7 = vector.broadcast %cst_2 : f32 to vector<4x1xf32>
    %8 = arith.maximumf %6, %7 : vector<4x1xf32>
    %9 = math.rsqrt %8 : vector<4x1xf32>
    %c0_i32 = arith.constant 0 : i32
    %10 = vector.broadcast %c0_i32 : i32 to vector<4x128xi32>
    %11 = arith.cmpi sge, %2, %10 : vector<4x128xi32>
    %c32_i32 = arith.constant 32 : i32
    %12 = vector.broadcast %c32_i32 : i32 to vector<4x128xi32>
    %13 = arith.cmpi slt, %2, %12 : vector<4x128xi32>
    %14 = arith.andi %11, %13 : vector<4x128xi1>
    %15 = vector.shape_cast %9 : vector<4x1xf32> to vector<4x1xf32>
    %16 = vector.broadcast %15 : vector<4x1xf32> to vector<4x128xf32>
    %17 = arith.select %14, %16, %3 : vector<4x128xi1>, vector<4x128xf32>
    %18 = vector.extract_strided_slice %1 {offsets = [0, 32], sizes = [4, 32], strides = [1, 1]} : vector<4x128xf32> to vector<4x32xf32>
    %cst_3 = arith.constant dense<0.000000e+00> : vector<4xf32>
    %19 = vector.multi_reduction <add>, %18, %cst_3 [1] : vector<4x32xf32> to vector<4xf32>
    %20 = vector.shape_cast %19 : vector<4xf32> to vector<4x1xf32>
    %cst_4 = arith.constant 1.000000e-24 : f32
    %21 = vector.broadcast %cst_4 : f32 to vector<4x1xf32>
    %22 = arith.maximumf %20, %21 : vector<4x1xf32>
    %23 = math.rsqrt %22 : vector<4x1xf32>
    %c32_i32_5 = arith.constant 32 : i32
    %24 = vector.broadcast %c32_i32_5 : i32 to vector<4x128xi32>
    %25 = arith.cmpi sge, %2, %24 : vector<4x128xi32>
    %c64_i32 = arith.constant 64 : i32
    %26 = vector.broadcast %c64_i32 : i32 to vector<4x128xi32>
    %27 = arith.cmpi slt, %2, %26 : vector<4x128xi32>
    %28 = arith.andi %25, %27 : vector<4x128xi1>
    %29 = vector.shape_cast %23 : vector<4x1xf32> to vector<4x1xf32>
    %30 = vector.broadcast %29 : vector<4x1xf32> to vector<4x128xf32>
    %31 = arith.select %28, %30, %17 : vector<4x128xi1>, vector<4x128xf32>
    %32 = vector.extract_strided_slice %1 {offsets = [0, 64], sizes = [4, 32], strides = [1, 1]} : vector<4x128xf32> to vector<4x32xf32>
    %cst_6 = arith.constant dense<0.000000e+00> : vector<4xf32>
    %33 = vector.multi_reduction <add>, %32, %cst_6 [1] : vector<4x32xf32> to vector<4xf32>
    %34 = vector.shape_cast %33 : vector<4xf32> to vector<4x1xf32>
    %cst_7 = arith.constant 1.000000e-24 : f32
    %35 = vector.broadcast %cst_7 : f32 to vector<4x1xf32>
    %36 = arith.maximumf %34, %35 : vector<4x1xf32>
    %37 = math.rsqrt %36 : vector<4x1xf32>
    %c64_i32_8 = arith.constant 64 : i32
    %38 = vector.broadcast %c64_i32_8 : i32 to vector<4x128xi32>
    %39 = arith.cmpi sge, %2, %38 : vector<4x128xi32>
    %c96_i32 = arith.constant 96 : i32
    %40 = vector.broadcast %c96_i32 : i32 to vector<4x128xi32>
    %41 = arith.cmpi slt, %2, %40 : vector<4x128xi32>
    %42 = arith.andi %39, %41 : vector<4x128xi1>
    %43 = vector.shape_cast %37 : vector<4x1xf32> to vector<4x1xf32>
    %44 = vector.broadcast %43 : vector<4x1xf32> to vector<4x128xf32>
    %45 = arith.select %42, %44, %31 : vector<4x128xi1>, vector<4x128xf32>
    %46 = vector.extract_strided_slice %1 {offsets = [0, 96], sizes = [4, 32], strides = [1, 1]} : vector<4x128xf32> to vector<4x32xf32>
    %cst_9 = arith.constant dense<0.000000e+00> : vector<4xf32>
    %47 = vector.multi_reduction <add>, %46, %cst_9 [1] : vector<4x32xf32> to vector<4xf32>
    %48 = vector.shape_cast %47 : vector<4xf32> to vector<4x1xf32>
    %cst_10 = arith.constant 1.000000e-24 : f32
    %49 = vector.broadcast %cst_10 : f32 to vector<4x1xf32>
    %50 = arith.maximumf %48, %49 : vector<4x1xf32>
    %51 = math.rsqrt %50 : vector<4x1xf32>
    %c96_i32_11 = arith.constant 96 : i32
    %52 = vector.broadcast %c96_i32_11 : i32 to vector<4x128xi32>
    %53 = arith.cmpi sge, %2, %52 : vector<4x128xi32>
    %c128_i32 = arith.constant 128 : i32
    %54 = vector.broadcast %c128_i32 : i32 to vector<4x128xi32>
    %55 = arith.cmpi slt, %2, %54 : vector<4x128xi32>
    %56 = arith.andi %53, %55 : vector<4x128xi1>
    %57 = vector.shape_cast %51 : vector<4x1xf32> to vector<4x1xf32>
    %58 = vector.broadcast %57 : vector<4x1xf32> to vector<4x128xf32>
    %59 = arith.select %56, %58, %45 : vector<4x128xi1>, vector<4x128xf32>
    %60 = arith.mulf %0, %59 : vector<4x128xf32>
    %c0_12 = arith.constant 0 : index
    %c0_13 = arith.constant 0 : index
    %61 = vector.load %arg2[%c0_12, %c0_13] : memref<4x128xf32, #tpu.memory_space<vmem>>, vector<4x128xf32>
    tpu.vector_store %arg2[%c0_12, %c0_13], %60 {strides = array<i32>} : memref<4x128xf32, #tpu.memory_space<vmem>>, vector<4x128xf32>,
    return
  }
  func.func @transform_0(%arg0: i32) -> (i32, i32) {
    %c0_i32 = arith.constant 0 : i32
    %c0_i32_0 = arith.constant 0 : i32
    return %arg0, %c0_i32 : i32, i32
  }
  func.func @transform_1(%arg0: i32) -> (i32, i32) {
    %c0_i32 = arith.constant 0 : i32
    %c0_i32_0 = arith.constant 0 : i32
    return %arg0, %c0_i32 : i32, i32
  }
}

</mosaic_0001>

<bundles_post_ra>
// kernel: tpu_custom_call.1
= control target key start
LH: loop header
LB: loop body
LE: loop exit
PB: predicated region body
PF: predicated region fallthrough
CT: control target
= control target key end

     0   :  { %6 = vsyncpa [#allocation3], 0  ;;  %s226_s0 = inlined_call_operand.hbm [shape: f32[4,128], index: 0, kind: input, shape index: {}]   ;;  %s227_s1 = inlined_call_operand.hbm [shape: f32[4,128], index: 1, kind: output, shape index: {}]  }
   0x1   :  { %7 = vsyncpa [#allocation4], 0  ;;  %s13_s8 = sshll.u32 %s226_s0, 4  ;;  %s194_s9 = smov [#allocation2]   ;;  %s14_s8 = int_to_ptr.hbm [resolvable:$true] %s13_s8 }
   0x2   :  { %s15_s10 = sshll.u32 %s194_s9, 4  ;;  %s16_s10 = int_to_ptr.vmem [resolvable:$true] %s15_s10 }
   0x3   :  { %18 = dma.hbm_to_vmem [thread:$0]  %s14_s8, 64, %s16_s10, [#allocation3]  }
   0x4   :  { %190 = dma.done.wait [#allocation3], 64  }
   0x5   :  { %191 = vsyncadd [#allocation3], 4294967232  ;;  %v212_v0 = vld [vmem:[#allocation2] sm:$0xf]  ;;  %s195_s11 = smov 32   ;;  %s196_s12 = smov 96   ;;  %v25_v28 = vlaneseq }
   0x6   :  { %v24_v1 = vmul.f32 %v212_v0, %v212_v0  ;;  %s197_s13 = smov 64   ;;  %vm27_vm0 = vcmask 257024   ;;  %s198_s0 = smov [#allocation5]  }
   0x7   :  { %v26_v34 = vand.u32 127, %v25_v28  ;;  %s117_s14 = sshll.u32 %s198_s0, 4  ;;  %s119_s17 = sshll.u32 %s227_s1, 4  ;;  %s118_s14 = int_to_ptr.vmem [resolvable:$true] %s117_s14  ;;  %s120_s17 = int_to_ptr.hbm [resolvable:$true] %s119_s17 }
   0x8   :  { %89 = vrot.lane.b32.xlu1 %v24_v1, %s195_s11  ;;  %47 = vrot.lane.b32.xlu0 %v24_v1, %s196_s12  ;;  %v28_v2 = vsel %vm27_vm0, %v24_v1, 0.0 }
   0x9   :  { %vm64_vm5 = vcmp.ge.s32.totalorder %v26_v34, 32  ;;  %vm65_vm6 = vcmp.lt.s32.totalorder %v26_v34, 64  ;;  %vm85_vm8 = vcmp.ge.s32.totalorder %v26_v34, 64  ;;  %vm86_vm9 = vcmp.lt.s32.totalorder %v26_v34, 96 }
   0xa   :  { %vm43_vm10 = vcmp.lt.s32.totalorder %v26_v34, 32  ;;  %vm66_vm13 = vmand %vm64_vm5, %vm65_vm6 }
  0x10   :  { %68 = vrot.lane.b32.xlu0 %v24_v1, %s197_s13 }
  0x32   :  { %29 = vadd.xlane.f32.xlu1 %v28_v2 }
  0x7a   :  { %v90_v3 = vpop.permute.xlu1 %89  ;;  %v48_v4 = vpop.permute.xlu0 %47 }
  0x7b   :  { %v92_v5 = vsel %vm27_vm0, %v90_v3, 0.0  ;;  %v50_v6 = vsel %vm27_vm0, %v48_v4, 0.0 }
  0x7c   :  { %93 = vadd.xlane.f32.xlu0 %v92_v5  ;;  %51 = vadd.xlane.f32.xlu2 %v50_v6 }
  0x82   :  { %v69_v7 = vpop.permute.xlu0 %68 }
  0x83   :  { %v71_v8 = vsel %vm27_vm0, %v69_v7, 0.0 }
  0x84   :  { %72 = vadd.xlane.f32.xlu2 %v71_v8 }
  0xa5   :  { %v30_v9 = vpop.xlane.xlu1 %29 }
  0xa6   :  { %v31_v10 = vmax.f32 %v30_v9, 1e-24 }
  0xa8   :  { %134 = vrsqrt.f32 %v31_v10  ;;  %vm38_vm1 = vweird.f32 %v31_v10 }
  0xae   :  { %v135_v13 = vpop.eup %134 }
  0xaf   :  { %v33_v16 = vmul.f32 %v135_v13, %v31_v10  ;;  %vm39_vm2 = vweird.f32 %v135_v13 }
  0xb0   :  { %vm216_vm3 = vmor %vm38_vm1, %vm39_vm2 }
  0xb1   :  { %v34_v17 = vmul.f32 %v135_v13, %v33_v16  ;;  %vm87_vm1 = vmand %vm85_vm8, %vm86_vm9 }
  0xb3   :  { %v35_v24 = vmul.f32 0.5, %v34_v17 }
  0xb5   :  { %v36_v29 = vsub.f32 1.5, %v35_v24 }
  0xb7   :  { %v37_v35 = vmul.f32 %v135_v13, %v36_v29 }
  0xb9   :  { %v41_v41 = vsel %vm216_vm3, %v135_v13, %v37_v35  ;;  %vm106_vm3 = vcmp.ge.s32.totalorder %v26_v34, 96 }
  0xba   :  { %v45_v46 = vsel %vm43_vm10, %v41_v41, 0.0 }
  0xef   :  { %v52_v11 = vpop.xlane.xlu2 %51  ;;  %v94_v12 = vpop.xlane.xlu0 %93 }
  0xf0   :  { %v53_v14 = vmax.f32 %v52_v11, 1e-24  ;;  %v95_v15 = vmax.f32 %v94_v12, 1e-24 }
  0xf2   :  { %136 = vrsqrt.f32 %v53_v14  ;;  %vm60_vm7 = vweird.f32 %v53_v14  ;;  %vm102_vm14 = vweird.f32 %v95_v15 }
  0xf3   :  { %138 = vrsqrt.f32 %v95_v15 }
  0xf7   :  { %v73_v18 = vpop.xlane.xlu2 %72 }
  0xf8   :  { %v137_v19 = vpop.eup %136  ;;  %v74_v20 = vmax.f32 %v73_v18, 1e-24 }
  0xf9   :  { %v139_v21 = vpop.eup %138  ;;  %v55_v22 = vmul.f32 %v137_v19, %v53_v14  ;;  %vm61_vm4 = vweird.f32 %v137_v19 }
  0xfa   :  { %v97_v23 = vmul.f32 %v139_v21, %v95_v15  ;;  %140 = vrsqrt.f32 %v74_v20  ;;  %vm62_vm11 = vmor %vm60_vm7, %vm61_vm4  ;;  %vm103_vm15 = vweird.f32 %v139_v21  ;;  %vm81_vm0 = vweird.f32 %v74_v20 }
  0xfb   :  { %v56_v25 = vmul.f32 %v137_v19, %v55_v22  ;;  %vm104_vm4 = vmor %vm102_vm14, %vm103_vm15 }
  0xfc   :  { %v98_v26 = vmul.f32 %v139_v21, %v97_v23 }
  0xfd   :  { %v57_v27 = vmul.f32 0.5, %v56_v25 }
  0xfe   :  { %v99_v32 = vmul.f32 0.5, %v98_v26 }
  0xff   :  { %v58_v31 = vsub.f32 1.5, %v57_v27 }
 0x100   :  { %v141_v30 = vpop.eup %140  ;;  %v100_v39 = vsub.f32 1.5, %v99_v32 }
 0x101   :  { %v76_v33 = vmul.f32 %v141_v30, %v74_v20  ;;  %v59_v38 = vmul.f32 %v137_v19, %v58_v31  ;;  %vm82_vm12 = vweird.f32 %v141_v30 }
 0x102   :  { %v101_v44 = vmul.f32 %v139_v21, %v100_v39  ;;  %vm83_vm2 = vmor %vm81_vm0, %vm82_vm12 }
 0x103   :  { %v77_v36 = vmul.f32 %v141_v30, %v76_v33  ;;  %v63_v43 = vsel %vm62_vm11, %v137_v19, %v59_v38 }
 0x104   :  { %v67_v47 = vsel %vm66_vm13, %v63_v43, %v45_v46  ;;  %v105_v49 = vsel %vm104_vm4, %v139_v21, %v101_v44 }
 0x105   :  { %v78_v40 = vmul.f32 0.5, %v77_v36 }
 0x107   :  { %v79_v42 = vsub.f32 1.5, %v78_v40 }
 0x109   :  { %v80_v45 = vmul.f32 %v141_v30, %v79_v42 }
 0x10b   :  { %v84_v48 = vsel %vm83_vm2, %v141_v30, %v80_v45 }
 0x10c   :  { %v88_v50 = vsel %vm87_vm1, %v84_v48, %v67_v47 }
 0x10d   :  { %v109_v51 = vsel %vm106_vm3, %v105_v49, %v88_v50 }
 0x10e   :  { %v110_v52 = vmul.f32 %v109_v51, %v212_v0 }
 0x110   :  { %111 = vst [vmem:[#allocation5] sm:$0xf] %v110_v52 }
 0x111   :  { %122 = dma.vmem_to_hbm [thread:$0]  %s118_s14, 64, %s120_s17, [#allocation4]  }
 0x112   :  { %192 = dma.done.wait [#allocation4], 64  }
 0x113   :  { %193 = vsyncadd [#allocation4], 4294967232 }
 0x114   :  { %127 = vsyncpa [#allocation3], 1 }
 0x115   :  { %128 = vsyncpa [#allocation4], 1 }

</bundles_post_ra>
